<compile_context>
chip_gen: v6e
topology: v6e:2x2x1
jax: 0.10.0
libtpu: 0.0.40
codegen_flags: <defaults>
</compile_context>

<pallas_src>
import jax
import jax.numpy as jnp
from jax.experimental import pallas as pl
from jax.experimental.pallas import tpu as pltpu


def _cbr_twice_kernel(w_ref, b_ref, x_ref, o_ref):
    """Two back-to-back fused Conv(1x1)+BN+ReLU, VPU-only.

    w_ref : SMEM (4,)  flattened fused weight [w00, w01, w10, w11],
            out_o = sum_i in_i * w[i, o]
    b_ref : SMEM (2,)  fused bias
    x_ref : VMEM (1, 2, Sblk, 128)  channel on a major axis; dense spatial tiles
    o_ref : VMEM (1, 2, Sblk, 128)
    """
    w00 = w_ref[0]
    w01 = w_ref[1]
    w10 = w_ref[2]
    w11 = w_ref[3]
    b0 = b_ref[0]
    b1 = b_ref[1]

    # Channel slices are along a major (non-tiled) axis: dense (Sblk,128) slabs.
    x0 = x_ref[:, 0:1, :, :]          # (1, 1, Sblk, 128)
    x1 = x_ref[:, 1:2, :, :]

    # CBR #1  (broadcast FMAs on the VPU, scalar weights)
    y0 = jnp.maximum(x0 * w00 + x1 * w10 + b0, 0.0)
    y1 = jnp.maximum(x0 * w01 + x1 * w11 + b1, 0.0)
    # CBR #2  (same fused block applied again)
    z0 = jnp.maximum(y0 * w00 + y1 * w10 + b0, 0.0)
    z1 = jnp.maximum(y0 * w01 + y1 * w11 + b1, 0.0)

    # Dense, unmasked full-tile stores (no sublane masking).
    o_ref[:, 0:1, :, :] = z0.astype(o_ref.dtype)
    o_ref[:, 1:2, :, :] = z1.astype(o_ref.dtype)


def cbr_twice(x_nchw, conv_w, conv_b, bn_gamma, bn_beta, bn_mean, bn_var,
              eps=1e-5):
    """Apply the fused CBR(2,2,1) block twice, like Model.forward.

    x_nchw : (N, 2, H, W) float32
    conv_w : (2, 2, 1, 1)   conv_b / bn_* : (2,)
    """
    N, C, H, W = x_nchw.shape
    assert C == 2, "CBR(2, 2, 1) expects 2 input channels"
    HW = H * W

    # --- fold eval-mode BatchNorm into the 1x1 conv (plain JAX glue) ---
    inv_std = 1.0 / jnp.sqrt(bn_var + eps)
    scale = bn_gamma * inv_std                                   # (C,)
    # conv_w (C_out, C_in, 1, 1) -> w_mat[in, out], scaled per out-channel
    w_mat = jnp.transpose(conv_w[:, :, 0, 0], (1, 0)) * scale[None, :]
    b_fused = (conv_b - bn_mean) * scale + bn_beta               # (C,)
    w_flat = w_mat.reshape(-1).astype(jnp.float32)               # (4,)
    b_flat = b_fused.astype(jnp.float32)                         # (2,)

    # --- layout: (N, C, S, 128) so spatial fills both sublane and lane dims ---
    lanes = 128
    s_total = pl.cdiv(HW, lanes)
    # Target ~2 MiB of input per block (per image): with double buffering of
    # input + output that's ~8 MiB of scoped VMEM -> fits the v5e 16 MiB
    # default, v6e/v7x 32 MiB defaults, and v7x's 64 MiB physical VMEM.
    target_sblk = max(8, (2 << 20) // (C * lanes * 4))           # = 2048 for C=2
    if s_total <= target_sblk:
        sblk = s_total                   # full-extent sublane dim (any size ok)
        s_pad = s_total
    else:
        sblk = (target_sblk // 8) * 8    # multiple of 8 sublanes
        s_pad = pl.cdiv(s_total, sblk) * sblk
    hw_pad = s_pad * lanes

    # NCHW -> (N, C, HW): free reshape; zero-pad spatial to the tile boundary.
    x_flat = x_nchw.reshape(N, C, HW)
    if hw_pad != HW:
        x_flat = jnp.pad(x_flat, ((0, 0), (0, 0), (0, hw_pad - HW)))
    x_view = x_flat.reshape(N, C, s_pad, lanes)

    grid = (N, s_pad // sblk)            # both axes independent -> "parallel"
    block = (1, C, sblk, lanes)

    out_view = pl.pallas_call(
        _cbr_twice_kernel,
        out_shape=jax.ShapeDtypeStruct((N, C, s_pad, lanes), x_view.dtype),
        grid=grid,
        in_specs=[
            pl.BlockSpec(memory_space=pltpu.MemorySpace.SMEM),   # w_flat (4,)
            pl.BlockSpec(memory_space=pltpu.MemorySpace.SMEM),   # b_flat (2,)
            pl.BlockSpec(block, lambda n, i: (n, 0, i, 0)),      # pixels
        ],
        out_specs=pl.BlockSpec(block, lambda n, i: (n, 0, i, 0)),
        compiler_params=pltpu.CompilerParams(
            dimension_semantics=("parallel", "parallel")),
    )(w_flat, b_flat, x_view)

    # (N, C, S, 128) -> (N, C, HW_pad) -> trim padding -> NCHW (free reshapes).
    out_flat = out_view.reshape(N, C, hw_pad)[:, :, :HW]
    return out_flat.reshape(N, C, H, W)


def _reference(x_nchw, conv_w, conv_b, bn_gamma, bn_beta, bn_mean, bn_var,
               eps=1e-5):
    """Pure-JAX reference of the same forward (correctness check)."""
    def cbr(x):
        y = jnp.einsum('nchw,oc->nohw', x, conv_w[:, :, 0, 0]) \
            + conv_b[None, :, None, None]
        inv_std = 1.0 / jnp.sqrt(bn_var + eps)
        y = (y - bn_mean[None, :, None, None]) * inv_std[None, :, None, None]
        y = y * bn_gamma[None, :, None, None] + bn_beta[None, :, None, None]
        return jnp.maximum(y, 0.0)
    return cbr(cbr(x_nchw))


if __name__ == "__main__":
    key = jax.random.PRNGKey(0)
    k_x, k_w, k_b, k_x2 = jax.random.split(key, 4)

    # CBR(2, 2, 1) -> 2 in / 2 out channels; spatial 16x16 so H*W = 256 lanes.
    N, C, H, W = 2, 2, 16, 16
    x = jax.random.normal(k_x, (N, C, H, W), dtype=jnp.float32)

    # deterministic synthetic parameters (no checkpoint load)
    conv_w = jax.random.normal(k_w, (C, C, 1, 1), dtype=jnp.float32) * 0.5
    conv_b = jax.random.normal(k_b, (C,), dtype=jnp.float32) * 0.1
    bn_gamma = jnp.ones((C,), dtype=jnp.float32) * 1.1
    bn_beta = jnp.ones((C,), dtype=jnp.float32) * 0.05
    bn_mean = jnp.ones((C,), dtype=jnp.float32) * 0.02
    bn_var = jnp.ones((C,), dtype=jnp.float32) * 0.9

    out = cbr_twice(x, conv_w, conv_b, bn_gamma, bn_beta, bn_mean, bn_var)
    out = jax.block_until_ready(out)
    ref = _reference(x, conv_w, conv_b, bn_gamma, bn_beta, bn_mean, bn_var)
    assert out.shape == (N, C, H, W)
    assert jnp.allclose(out, ref, atol=1e-5, rtol=1e-5), "mismatch vs reference"

    # Second small check exercising the padding / ragged-spatial path.
    x2 = jax.random.normal(k_x2, (1, C, 17, 19), dtype=jnp.float32)
    out2 = jax.block_until_ready(
        cbr_twice(x2, conv_w, conv_b, bn_gamma, bn_beta, bn_mean, bn_var))
    ref2 = _reference(x2, conv_w, conv_b, bn_gamma, bn_beta, bn_mean, bn_var)
    assert out2.shape == x2.shape
    assert jnp.allclose(out2, ref2, atol=1e-5, rtol=1e-5), "mismatch (padded)"

    print("KERNEL_OK")
</pallas_src>

<mosaic_0001>
module attributes {stable_mosaic.version = 11 : i64} {
  func.func @_cbr_twice_kernel(%arg0: i32, %arg1: i32, %arg2: memref<4xf32, #tpu.memory_space<smem>>, %arg3: memref<2xf32, #tpu.memory_space<smem>>, %arg4: memref<1x2x2x128xf32, #tpu.memory_space<vmem>>, %arg5: memref<1x2x2x128xf32, #tpu.memory_space<vmem>>) attributes {dimension_semantics = [#tpu.dimension_semantics<parallel>, #tpu.dimension_semantics<parallel>], iteration_bounds = array<i64: 2, 1>, scalar_prefetch = 0 : i64, scratch_operands = 0 : i64, tpu.core_type = #tpu.core_type<tc>, window_params = [{transform_indices = @transform_0, window_bounds = array<i64: 4>}, {transform_indices = @transform_1, window_bounds = array<i64: 2>}, {transform_indices = @transform_2, window_bounds = array<i64: 1, 2, 2, 128>}, {transform_indices = @transform_3, window_bounds = array<i64: 1, 2, 2, 128>}]} {
    %c0 = arith.constant 0 : index
    %0 = memref.load %arg2[%c0] : memref<4xf32, #tpu.memory_space<smem>>
    %c1 = arith.constant 1 : index
    %1 = memref.load %arg2[%c1] : memref<4xf32, #tpu.memory_space<smem>>
    %c2 = arith.constant 2 : index
    %2 = memref.load %arg2[%c2] : memref<4xf32, #tpu.memory_space<smem>>
    %c3 = arith.constant 3 : index
    %3 = memref.load %arg2[%c3] : memref<4xf32, #tpu.memory_space<smem>>
    %c0_0 = arith.constant 0 : index
    %4 = memref.load %arg3[%c0_0] : memref<2xf32, #tpu.memory_space<smem>>
    %c1_1 = arith.constant 1 : index
    %5 = memref.load %arg3[%c1_1] : memref<2xf32, #tpu.memory_space<smem>>
    %c0_2 = arith.constant 0 : index
    %c0_3 = arith.constant 0 : index
    %c0_4 = arith.constant 0 : index
    %c0_5 = arith.constant 0 : index
    %6 = vector.load %arg4[%c0_2, %c0_3, %c0_4, %c0_5] : memref<1x2x2x128xf32, #tpu.memory_space<vmem>>, vector<1x1x2x128xf32>
    %c0_6 = arith.constant 0 : index
    %c1_7 = arith.constant 1 : index
    %c0_8 = arith.constant 0 : index
    %c0_9 = arith.constant 0 : index
    %7 = vector.load %arg4[%c0_6, %c1_7, %c0_8, %c0_9] : memref<1x2x2x128xf32, #tpu.memory_space<vmem>>, vector<1x1x2x128xf32>
    %8 = vector.broadcast %0 : f32 to vector<1x1x2x128xf32>
    %9 = arith.mulf %6, %8 : vector<1x1x2x128xf32>
    %10 = vector.broadcast %2 : f32 to vector<1x1x2x128xf32>
    %11 = arith.mulf %7, %10 : vector<1x1x2x128xf32>
    %12 = arith.addf %9, %11 : vector<1x1x2x128xf32>
    %13 = vector.broadcast %4 : f32 to vector<1x1x2x128xf32>
    %14 = arith.addf %12, %13 : vector<1x1x2x128xf32>
    %cst = arith.constant 0.000000e+00 : f32
    %15 = vector.broadcast %cst : f32 to vector<1x1x2x128xf32>
    %16 = arith.maximumf %14, %15 : vector<1x1x2x128xf32>
    %17 = vector.broadcast %1 : f32 to vector<1x1x2x128xf32>
    %18 = arith.mulf %6, %17 : vector<1x1x2x128xf32>
    %19 = vector.broadcast %3 : f32 to vector<1x1x2x128xf32>
    %20 = arith.mulf %7, %19 : vector<1x1x2x128xf32>
    %21 = arith.addf %18, %20 : vector<1x1x2x128xf32>
    %22 = vector.broadcast %5 : f32 to vector<1x1x2x128xf32>
    %23 = arith.addf %21, %22 : vector<1x1x2x128xf32>
    %cst_10 = arith.constant 0.000000e+00 : f32
    %24 = vector.broadcast %cst_10 : f32 to vector<1x1x2x128xf32>
    %25 = arith.maximumf %23, %24 : vector<1x1x2x128xf32>
    %26 = vector.broadcast %0 : f32 to vector<1x1x2x128xf32>
    %27 = arith.mulf %16, %26 : vector<1x1x2x128xf32>
    %28 = vector.broadcast %2 : f32 to vector<1x1x2x128xf32>
    %29 = arith.mulf %25, %28 : vector<1x1x2x128xf32>
    %30 = arith.addf %27, %29 : vector<1x1x2x128xf32>
    %31 = vector.broadcast %4 : f32 to vector<1x1x2x128xf32>
    %32 = arith.addf %30, %31 : vector<1x1x2x128xf32>
    %cst_11 = arith.constant 0.000000e+00 : f32
    %33 = vector.broadcast %cst_11 : f32 to vector<1x1x2x128xf32>
    %34 = arith.maximumf %32, %33 : vector<1x1x2x128xf32>
    %35 = vector.broadcast %1 : f32 to vector<1x1x2x128xf32>
    %36 = arith.mulf %16, %35 : vector<1x1x2x128xf32>
    %37 = vector.broadcast %3 : f32 to vector<1x1x2x128xf32>
    %38 = arith.mulf %25, %37 : vector<1x1x2x128xf32>
    %39 = arith.addf %36, %38 : vector<1x1x2x128xf32>
    %40 = vector.broadcast %5 : f32 to vector<1x1x2x128xf32>
    %41 = arith.addf %39, %40 : vector<1x1x2x128xf32>
    %cst_12 = arith.constant 0.000000e+00 : f32
    %42 = vector.broadcast %cst_12 : f32 to vector<1x1x2x128xf32>
    %43 = arith.maximumf %41, %42 : vector<1x1x2x128xf32>
    %c0_13 = arith.constant 0 : index
    %c0_14 = arith.constant 0 : index
    %c0_15 = arith.constant 0 : index
    %c0_16 = arith.constant 0 : index
    %44 = vector.load %arg5[%c0_13, %c0_14, %c0_15, %c0_16] : memref<1x2x2x128xf32, #tpu.memory_space<vmem>>, vector<1x1x2x128xf32>
    tpu.vector_store %arg5[%c0_13, %c0_14, %c0_15, %c0_16], %34 {strides = array<i32>} : memref<1x2x2x128xf32, #tpu.memory_space<vmem>>, vector<1x1x2x128xf32>,
    %c0_17 = arith.constant 0 : index
    %c1_18 = arith.constant 1 : index
    %c0_19 = arith.constant 0 : index
    %c0_20 = arith.constant 0 : index
    %45 = vector.load %arg5[%c0_17, %c1_18, %c0_19, %c0_20] : memref<1x2x2x128xf32, #tpu.memory_space<vmem>>, vector<1x1x2x128xf32>
    tpu.vector_store %arg5[%c0_17, %c1_18, %c0_19, %c0_20], %43 {strides = array<i32>} : memref<1x2x2x128xf32, #tpu.memory_space<vmem>>, vector<1x1x2x128xf32>,
    return
  }
  func.func @transform_0(%arg0: i32, %arg1: i32) -> i32 {
    %c0_i32 = arith.constant 0 : i32
    %c0_i32_0 = arith.constant 0 : i32
    return %c0_i32 : i32
  }
  func.func @transform_1(%arg0: i32, %arg1: i32) -> i32 {
    %c0_i32 = arith.constant 0 : i32
    %c0_i32_0 = arith.constant 0 : i32
    return %c0_i32 : i32
  }
  func.func @transform_2(%arg0: i32, %arg1: i32) -> (i32, i32, i32, i32) {
    %c0_i32 = arith.constant 0 : i32
    %c0_i32_0 = arith.constant 0 : i32
    %c0_i32_1 = arith.constant 0 : i32
    return %arg0, %c0_i32, %arg1, %c0_i32_0 : i32, i32, i32, i32
  }
  func.func @transform_3(%arg0: i32, %arg1: i32) -> (i32, i32, i32, i32) {
    %c0_i32 = arith.constant 0 : i32
    %c0_i32_0 = arith.constant 0 : i32
    %c0_i32_1 = arith.constant 0 : i32
    return %arg0, %c0_i32, %arg1, %c0_i32_0 : i32, i32, i32, i32
  }
}

</mosaic_0001>

<bundles_post_ra>
// kernel: tpu_custom_call.1
= control target key start
LH: loop header
LB: loop body
LE: loop exit
PB: predicated region body
PF: predicated region fallthrough
CT: control target
= control target key end

     0   :  { %s863_s0 = inlined_call_operand.hbm [shape: f32[4], index: 0, kind: input, shape index: {}]   ;;  %s864_s1 = inlined_call_operand.vmem [shape: f32[2], index: 1, kind: input, shape index: {}]   ;;  %s865_s2 = inlined_call_operand.hbm [shape: f32[2,2,2,128], index: 2, kind: input, shape index: {}]   ;;  %s866_s3 = inlined_call_operand.hbm [shape: f32[2,2,2,128], index: 3, kind: output, shape index: {}]  }
   0x1   :  { %868 = sst [smem:[#allocation14_spill]] %s863_s0 }
   0x2   :  { %8 = vsyncpa [#allocation5], 0 }
   0x3   :  { %9 = vsyncpa [#allocation6], 0 }
   0x4   :  { %10 = vsyncpa [#allocation3], 0 }
   0x5   :  { %12 = vsyncpa [#allocation3 + $0x1], 0 }
   0x6   :  { %13 = vsyncpa [#allocation4], 0 }
   0x7   :  { %15 = vsyncpa [#allocation4 + $0x1], 0  ;;  %s679_s12 = smov 0   ;;  %s681_s13 = smov 0  }
   0x8   :  { %s683_s14 = smov 0   ;;  %s685_s15 = smov 0  }
   0x9   :  { %s687_s16 = smov 0   ;;  %s689_s17 = smov 0  }
   0xa LB: > { %s393_s18 = sadd.s32 4294967295, %s649_s17   ;;  %s394_s19 = sadd.s32 4294967294, %s649_s17   ;;  %s649_s17 = sphi %s689_s17, %s21_s17   ;;  %s645_s16 = sphi %s687_s16, %s884_s16   ;;  %s641_s15 = sphi %s685_s15, %s883_s15   ;;  %s637_s14 = sphi %s683_s14, %s882_s14   ;;  %s633_s13 = sphi %s681_s13, %s881_s13   ;;  %s629_s12 = sphi %s679_s12, %s880_s12  }
   0xb   : > { %s84_s20 = sadd.s32 1, %s637_s14  ;;  %p91_p0 = scmp.ne.s32.totalorder %s637_s14, %s633_s13 }
   0xc   : > { %p92_p1 = scmp.eq.s32.totalorder %s649_s17, 0  ;;  %p97_p2 = scmp.ne.s32.totalorder %s633_s13, %s629_s12 }
   0xd   : > { %p717_p3 = scmp.eq.s32.totalorder %s393_s18, 0  ;;  %p123_p4 = scmp.eq.s32.totalorder %s393_s18, 1 }
   0xe   : > { %p93_p5 = por %p92_p1, %p91_p0  ;;  %p129_p6 = scmp.eq.s32.totalorder %s394_s19, 1 }
   0xf   : > { %p723_p7 = por %p717_p3, %p97_p2  ;;  %p727_p8 = por %p123_p4, %p91_p0 }
  0x10   : > { %p731_p9 = por %p129_p6, %p97_p2  ;;  %p395_p10 = scmp.ge.s32.totalorder %s649_s17, 1 }
  0x11   : > { %s871_s23 = scalar_select %p727_p8, 1, 0 }
  0x12   : > { %s872_s24 = scalar_select %p731_p9, 1, 0 }
  0x13   : > { %p136_p11 = scmp.lt.s32.totalorder %s649_s17, 3  ;;  %p449_p1 = scmp.lt.s32.totalorder %s649_s17, 2 }
  0x14   : > { %s158_s28 = sshll.u32 %s864_s1, 4  ;;  %s169_s4 = sand.u32 1, %s637_s14   ;;  %s159_s28 = int_to_ptr.vmem [resolvable:$true] %s158_s28 }
  0x15   : > { %p738_p13 = pnand %p395_p10, %p136_p11  ;;  %p748_p4 = pnand %p449_p1, %p93_p5 }
  0x16   : > { %s33_s5 = sadd.s32 1, %s645_s16  ;;  %s651_s6 = smov [#allocation2]  }
  0x17   : > { %p432_p0 = pneg %p738_p13  ;;  %s876_s0 = sld [smem:[#allocation14_spill]] }
  0x18   : > { %s518_s9 = scalar_lea.vmem %s159_s28, 16  ;;  %p526_p1 = scmp.lt.s32.totalorder %s159_s28, %s159_s28 }
  0x19   : > { %p754_p2 = pnand %p432_p0, %p717_p3  ;;  %p519_p5 = scmp.ne.s32.totalorder %s159_s28, %s518_s9 }
  0x1a   : > { %p527_p0 = scmp.lt.s32.totalorder %s518_s9, %s518_s9 }
  0x1b   : > { %p520_p6 = pneg %p754_p2 }
  0x1c   : > { %p528_p12 = por %p527_p0, %p526_p1 }
  0x1d   : > { %435 = dma.hbm_to_smem (!%p754_p2), %s876_s0, 16, %s651_s6, [#allocation5]  }
  0x1e   : > { %p521_p10 = pnand %p520_p6, %p519_p5 }
  0x20   : > { %p522_p11 = pneg %p521_p10 }
  0x22   : > { %p529_p9 = pnand %p528_p12, %p522_p11 }
  0x24   : > { %532 = shalt.err (!%p529_p9)
}
  0x25   : > { %s652_s10 = smov [#allocation7]   ;;  %p35_p8 = scmp.ge.s32.totalorder %s33_s5, 2 }
  0x26   : > { %438 = dma.vmem_to_smem (!%p754_p2), %s159_s28, 16, %s652_s10, [#allocation6]  }
  0x27   : > { %s399_s11 = sshll.u32 %s169_s4, 2  ;;  %s418_s18 = sshll.u32 %s645_s16, 6 }
  0x28   : > { %s886_s5 = smov (%p35_p8, %s33_s5), 0  ;;  %s180_s27 = scalar_lea.hbm %s865_s2, %s418_s18 }
  0x29   : > { %s79_s6 = ssub.s32 %s645_s16, %s886_s5  ;;  %s173_s7 = scalar_lea.vmem [#allocation8], %s399_s11 }
  0x2a   : > { %s181_s8 = sshll.u32 %s173_s7, 4  ;;  %p82_p9 = scmp.eq.s32.totalorder %s79_s6, 0  ;;  %s182_s8 = int_to_ptr.vmem [resolvable:$true] %s181_s8 }
  0x2b   : > { %s170_s9 = scalar_lea.sflag [#allocation3], %s169_s4  ;;  %p535_p12 = pneg %p748_p4 }
  0x2c   : > { %s780_s30 = scalar_select %p82_p9, %s637_s14, %s84_s20  }
  0x2d   : > { %s546_s28 = scalar_lea.vmem %s182_s8, 64  ;;  %s653_s10 = smov [#allocation8]  }
  0x2e   : > { %p547_p2 = scmp.ne.s32.totalorder %s182_s8, %s546_s28  ;;  %s551_s0 = sshll.u32 %s653_s10, 4  ;;  %s552_s0 = int_to_ptr.vmem [resolvable:$false] %s551_s0 }
  0x2f   : > { %s553_s19 = scalar_lea.vmem %s552_s0, 128  ;;  %p554_p6 = scmp.lt.s32.totalorder %s182_s8, %s552_s0 }
  0x30   : > { %p549_p8 = pnand %p547_p2, %p535_p12  ;;  %p555_p10 = scmp.lt.s32.totalorder %s553_s19, %s546_s28 }
  0x32   : > { %p550_p5 = pneg %p549_p8  ;;  %p556_p11 = por %p555_p10, %p554_p6 }
  0x34   : > { %p557_p1 = pnand %p556_p11, %p550_p5 }
  0x36   : > { %560 = shalt.err (!%p557_p1)
}
  0x37   : > { %s654_s11 = smov 32   ;;  %s655_s20 = smov 2  }
  0x38   : > { %442 = dma.hbm_to_vmem [thread:$0]  (!%p748_p4), %s180_s27, 64, %s182_s8, %s170_s9, %s654_s11, %s654_s11, %s655_s20  }
  0x39   : > { %193 = sbr.rel (%p738_p13) target bundleno = 111 (0x6f), region = 32 }
  0x3e   : > { %612 = dma.done.wait (%p717_p3), [#allocation5], 16  }
  0x3f   : > { %614 = vsyncadd (%p717_p3), [#allocation5], 4294967280 }
  0x40   : > { %616 = dma.done.wait (%p717_p3), [#allocation6], 16  }
  0x41   : > { %618 = vsyncadd (%p717_p3), [#allocation6], 4294967280  ;;  %s797_s0 = sand.u32 1, %s633_s13  }
  0x42   : > { %s405_s25 = sshll.u32 %s797_s0, 2  ;;  %s204_s29 = scalar_lea.sflag [#allocation3], %s797_s0 }
  0x43   : > { %s207_s4 = scalar_lea.vmem [#allocation8], %s405_s25 }
  0x44   : > { %620 = dma.done.wait (%p723_p7), %s204_s29, 64  }
  0x45   : > { %622 = vsyncadd (%p723_p7), %s204_s29, 4294967232 }
  0x46   : > { %212 = sfence }
  0x47   : > { %s231_s18 = sld [smem:[#allocation2]]  ;;  %v237_v0 = vld [vmem:[%s207_s4] sm:$0x3]  ;;  %v411_v1 = vld [vmem:[%s207_s4 + $0x2] sm:$0x3]  ;;  %s230_s22 = scalar_lea.vmem [#allocation9], %s405_s25 }
  0x48   : > { %s407_s21 = sld [smem:[#allocation2 + $0x1]]  ;;  %s284_s8 = sshll.u32 %s230_s22, 4  ;;  %s810_s8 = int_to_ptr.vmem [resolvable:$true] %s284_s8 }
  0x49   : > { %s408_s26 = sld [smem:[#allocation2 + $0x2]]  ;;  %s419_s9 = sshll.u32 %s641_s15, 6 }
  0x4a   : > { %s409_s27 = sld [smem:[#allocation2 + $0x3]]  ;;  %s815_s19 = scalar_lea.hbm %s866_s3, %s419_s9 }
  0x4b   : > { %s235_s6 = sld [smem:[#allocation7]]  ;;  %s270_s11 = scalar_lea.sflag [#allocation4], %s797_s0 }
  0x4c   : > { %s410_s7 = sld [smem:[#allocation7 + $0x1]]  ;;  %s561_s20 = scalar_lea.vmem %s810_s8, 64 }
  0x4d   : > { %v240_v2 = vstv %s231_s18  ;;  %p562_p3 = scmp.ne.s32.totalorder %s810_s8, %s561_s20  ;;  %p877_p7 = scmp.ne.s32.totalorder %s871_s23, 0 }
  0x4e   : > { %v241_v3 = vmul.f32 %v240_v2, %v237_v0  ;;  %v248_v4 = vstv %s407_s21  ;;  %s656_s15 = smov [#allocation9]  }
  0x4f   : > { %v242_v5 = vstv %s408_s26  ;;  %v249_v6 = vmul.f32 %v248_v4, %v237_v0  ;;  %p563_p13 = pnand %p562_p3, %p877_p7  ;;  %s565_s25 = sshll.u32 %s656_s15, 4  ;;  %s566_s25 = int_to_ptr.vmem [resolvable:$false] %s565_s25 }
  0x50   : > { %v243_v7 = vmul.f32 %v411_v1, %v242_v5  ;;  %v250_v8 = vstv %s409_s27  ;;  %s567_s29 = scalar_lea.vmem %s566_s25, 128  ;;  %p568_p0 = scmp.lt.s32.totalorder %s810_s8, %s566_s25 }
  0x51   : > { %v245_v9 = vstv %s235_s6  ;;  %v251_v10 = vmul.f32 %v411_v1, %v250_v8  ;;  %p564_p4 = pneg %p563_p13  ;;  %p569_p9 = scmp.lt.s32.totalorder %s567_s29, %s561_s20 }
  0x52   : > { %v244_v11 = vadd.f32 %v243_v7, %v241_v3  ;;  %v253_v12 = vstv %s410_s7 }
  0x53   : > { %v252_v13 = vadd.f32 %v251_v10, %v249_v6  ;;  %p570_p12 = por %p569_p9, %p568_p0 }
  0x54   : > { %v246_v14 = vadd.f32 %v245_v9, %v244_v11 }
  0x55   : > { %v254_v15 = vadd.f32 %v253_v12, %v252_v13  ;;  %p571_p2 = pnand %p570_p12, %p564_p4 }
  0x56   : > { %v247_v16 = vmax.f32 %v246_v14, 0.0 }
  0x57   : > { %v255_v17 = vmax.f32 %v254_v15, 0.0 }
  0x58   : > { %v256_v18 = vmul.f32 %v247_v16, %v240_v2  ;;  %v261_v19 = vmul.f32 %v248_v4, %v247_v16 }
  0x59   : > { %v257_v20 = vmul.f32 %v255_v17, %v242_v5  ;;  %v262_v21 = vmul.f32 %v255_v17, %v250_v8 }
  0x5b   : > { %v258_v22 = vadd.f32 %v257_v20, %v256_v18  ;;  %v263_v23 = vadd.f32 %v262_v21, %v261_v19 }
  0x5d   : > { %v259_v24 = vadd.f32 %v258_v22, %v245_v9  ;;  %v264_v25 = vadd.f32 %v263_v23, %v253_v12 }
  0x5f   : > { %v260_v26 = vmax.f32 %v259_v24, 0.0  ;;  %v265_v27 = vmax.f32 %v264_v25, 0.0 }
  0x61   : > { %266 = vst [vmem:[%s230_s22] sm:$0x3] %v260_v26  ;;  %412 = vst [vmem:[%s230_s22 + $0x2] sm:$0x3] %v265_v27 }
  0x62   : > { %574 = shalt.err (!%p571_p2)
}
  0x63   : > { %s575_s4 = scalar_lea.hbm %s815_s19, 64  ;;  %s579_s26 = scalar_lea.hbm %s866_s3, 128 }
  0x64   : > { %p576_p8 = scmp.ne.s32.totalorder %s815_s19, %s575_s4  ;;  %p580_p10 = scmp.lt.s32.totalorder %s815_s19, %s866_s3 }
  0x65   : > { %p581_p11 = scmp.lt.s32.totalorder %s579_s26, %s575_s4 }
  0x66   : > { %p577_p5 = pnand %p576_p8, %p877_p7 }
  0x67   : > { %p582_p1 = por %p581_p11, %p580_p10 }
  0x68   : > { %p578_p6 = pneg %p577_p5 }
  0x6a   : > { %p583_p3 = pnand %p582_p1, %p578_p6 }
  0x6c   : > { %586 = shalt.err (!%p583_p3)
}
  0x6d   : > { %s657_s7 = smov 32   ;;  %s658_s22 = smov 2  }
  0x6e   : > { %430 = dma.vmem_to_hbm [thread:$0]  (%p877_p7), %s810_s8, 64, %s815_s19, %s270_s11, %s657_s7, %s657_s7, %s658_s22  }
  0x6f PF: > { %s299_s9 = sand.u32 1, %s629_s12   ;;  %p878_p13 = scmp.ne.s32.totalorder %s872_s24, 0 }
  0x70   : > { %p879_p4 = scmp.ge.s32.totalorder %s649_s17, 2  ;;  %s300_s28 = scalar_lea.sflag [#allocation4], %s299_s9 }
  0x72   : > { %p444_p0 = pnand %p879_p4, %p878_p13 }
  0x74   : > { %p445_p9 = pneg %p444_p0 }
  0x76   : > { %624 = dma.done.wait (%p445_p9), %s300_s28, 64  }
  0x77   : > { %626 = vsyncadd (%p445_p9), %s300_s28, 4294967232  ;;  %s21_s17 = sadd.s32 1, %s649_s17   ;;  %s880_s12 = smov %s633_s13 }
  0x78   : > { %p18_p12 = scmp.ge.s32.totalorder %s21_s17, 4   ;;  %s881_s13 = smov %s637_s14 }
  0x79   : > { %s882_s14 = smov %s780_s30  ;;  %s883_s15 = smov %s645_s16 }
  0x7a   : > { %s884_s16 = smov %s886_s5  ;;  %20 = sbr.rel (!%p18_p12) target bundleno = 10 (0xa), region = 89 }
  0x7f   :  { %305 = vsyncpa [#allocation3], 1 }
  0x80   :  { %307 = vsyncpa [#allocation3 + $0x1], 1 }
  0x81   :  { %308 = vsyncpa [#allocation4], 1 }
  0x82   :  { %310 = vsyncpa [#allocation4 + $0x1], 1 }
  0x83   :  { %311 = vsyncpa [#allocation5], 1 }
  0x84   :  { %313 = vsyncpa [#allocation5 + $0x1], 1 }
  0x85   :  { %314 = vsyncpa [#allocation6], 1 }
  0x86   :  { %316 = vsyncpa [#allocation6 + $0x1], 1 }

</bundles_post_ra>
